<compile_context>
chip_gen: v7x
topology: tpu7x:2x2x1
jax: 0.10.0
libtpu: 0.0.40
codegen_flags: <defaults>
</compile_context>

<pallas_src>
import functools
import math

import jax
import jax.numpy as jnp
from jax import lax
from jax.experimental import pallas as pl
from jax.experimental.pallas import tpu as pltpu

EPS = 1e-07
LANES = 128


def _round_up(a, b):
    return ((a + b - 1) // b) * b


def _nce_avg_kernel(x_ref, all_ref, pos_ref, *, tile_b, cols, bsz,
                    tiles_per_shard, c_eps, needs_mask):
    s = pl.program_id(0)          # shard (parallel across TensorCores on v7x)
    t = pl.program_id(1)          # row-tile within the shard (sequential)

    @pl.when(t == 0)
    def _init():
        all_ref[...] = jnp.zeros_like(all_ref)
        pos_ref[...] = jnp.zeros_like(pos_ref)

    x = x_ref[...].astype(jnp.float32)                 # (tile_b, cols)
    lg = jnp.log(x + jnp.float32(c_eps))               # log(x + c + eps), all columns
    lp = jnp.log(x[:, 0:1])                            # log(x_pos)

    def _accumulate(lg_v, lp_v):
        # Sublane-group partial sums only (pure VALU adds, no XLU reduce).
        g = tile_b // 8
        all_ref[...] += lg_v.reshape(g, 8, cols).sum(axis=0)[None]
        pos_ref[...] += lp_v.reshape(g, 8, 1).sum(axis=0)[None]

    if needs_mask:
        # Only the last real tile (and clamped overhang steps) take this
        # masked path; full tiles stay mask-free.
        n_valid = bsz - (s * tiles_per_shard + t) * tile_b

        @pl.when(n_valid >= tile_b)
        def _full_tile():
            _accumulate(lg, lp)

        @pl.when(n_valid < tile_b)
        def _tail_tile():
            rid = lax.broadcasted_iota(jnp.int32, (tile_b, 1), 0)
            keep = rid < n_valid
            _accumulate(jnp.where(keep, lg, 0.0), jnp.where(keep, lp, 0.0))
    else:
        _accumulate(lg, lp)


def nce_avg_criterion(x, n_data, *, block_rows=None,
                      vmem_buffer_bytes=2 * 1024 * 1024):
    """Pallas implementation of NCEAvgCriterion(n_data).forward(x).

    x: (bsz, m+1) positive scores, column 0 is the positive sample.
    Returns a float32 array of shape (1,), matching the PyTorch module.
    """
    bsz, cols = x.shape
    m = cols - 1
    pn = 1.0 / float(n_data)
    c = float(m) * pn
    c_eps = c + EPS

    itemsize = jnp.dtype(x.dtype).itemsize
    sub = {4: 8, 2: 16, 1: 32}.get(itemsize, 8)        # dtype sublane multiple
    lane_cols = _round_up(cols, LANES)                 # physical lane footprint

    # Row-tile size: target ~vmem_buffer_bytes per (double-buffered) input
    # buffer; rounded to the dtype's sublane multiple.
    if block_rows is None:
        block_rows = vmem_buffer_bytes // (lane_cols * itemsize)
    tile_b = max(sub, (block_rows // sub) * sub)
    tile_b = min(tile_b, _round_up(bsz, sub))

    num_tiles = -(-bsz // tile_b)
    # Outer "parallel" shard axis: lets v7x use both TensorCores; on v5e/v6e
    # (single TC) it just splits the sequential loop — no cost.
    num_shards = 2 if num_tiles >= 2 else 1
    tiles_per_shard = -(-num_tiles // num_shards)
    needs_mask = (bsz % tile_b != 0) or (num_shards * tiles_per_shard != num_tiles)

    kernel = functools.partial(
        _nce_avg_kernel, tile_b=tile_b, cols=cols, bsz=bsz,
        tiles_per_shard=tiles_per_shard, c_eps=c_eps, needs_mask=needs_mask)

    def x_index(s, t):
        # Clamp overhang steps (odd tile count split over 2 shards) onto the
        # last real tile; their contribution is masked to zero in-kernel.
        return (jnp.minimum(s * tiles_per_shard + t, num_tiles - 1), 0)

    o_all, o_pos = pl.pallas_call(
        kernel,
        out_shape=(
            jax.ShapeDtypeStruct((num_shards, 8, cols), jnp.float32),
            jax.ShapeDtypeStruct((num_shards, 8, 1), jnp.float32),
        ),
        grid_spec=pltpu.PrefetchScalarGridSpec(
            num_scalar_prefetch=0,
            grid=(num_shards, tiles_per_shard),
            in_specs=[pl.BlockSpec((tile_b, cols), x_index)],
            out_specs=[
                pl.BlockSpec((1, 8, cols), lambda s, t: (s, 0, 0)),
                pl.BlockSpec((1, 8, 1), lambda s, t: (s, 0, 0)),
            ],
        ),
        compiler_params=pltpu.CompilerParams(
            dimension_semantics=("parallel", "arbitrary"),
            vmem_limit_bytes=32 * 1024 * 1024,
        ),
    )(x)

    # Tiny combine (a few hundred floats) + final scalar math in plain JAX.
    col_sums = jnp.sum(o_all, axis=(0, 1))            # (cols,): sums of log(x + c + eps)
    sum_log_pos = jnp.sum(o_pos)                       # sum_i log(x[i, 0])
    sum_d1 = sum_log_pos - col_sums[0]                 # sum_i log_D1
    sum_d0 = (jnp.float32(bsz * m) * jnp.float32(math.log(c))
              - jnp.sum(col_sums[1:]))                 # sum_{i,j>=1} log_D0
    loss = -(sum_d1 + sum_d0 / jnp.float32(bsz * m)) / jnp.float32(bsz)
    return loss.reshape(1)


def _reference(x, n_data):
    # Pure-JAX reference mirroring the PyTorch code exactly.
    bsz = x.shape[0]
    m = x.shape[1] - 1
    pn = 1.0 / float(n_data)
    c = m * pn
    p_pos = x[:, 0]
    log_d1 = jnp.log(p_pos / (p_pos + c + EPS))
    p_neg = x[:, 1:]
    log_d0 = jnp.log(c / (p_neg + c + EPS))
    return -(jnp.sum(log_d1, axis=0) + jnp.mean(log_d0.reshape(-1, 1), axis=0)) / bsz


if __name__ == "__main__":
    n_data = 4096

    # Primary small example: 8 samples, 1 positive + 16 negatives each.
    bsz, m_plus_1 = 8, 17
    x = jax.random.uniform(jax.random.PRNGKey(0), (bsz, m_plus_1),
                           dtype=jnp.float32, minval=1e-4, maxval=1.0)
    loss = nce_avg_criterion(x, n_data)
    jax.block_until_ready(loss)
    ref = _reference(x, n_data)
    assert loss.shape == (1,)
    assert jnp.allclose(loss, ref, rtol=1e-4, atol=1e-5), (loss, ref)

    # Exercise the multi-tile path: 2 shards + masked partial tail tile.
    x2 = jax.random.uniform(jax.random.PRNGKey(1), (1000, 17),
                            dtype=jnp.float32, minval=1e-4, maxval=1.0)
    loss2 = nce_avg_criterion(x2, n_data, block_rows=64)
    jax.block_until_ready(loss2)
    assert jnp.allclose(loss2, _reference(x2, n_data), rtol=1e-4, atol=1e-5), loss2

    # Exercise shard overhang (odd tile count) + masked partial tail tile.
    loss3 = nce_avg_criterion(x2, n_data, block_rows=96)
    jax.block_until_ready(loss3)
    assert jnp.allclose(loss3, _reference(x2, n_data), rtol=1e-4, atol=1e-5), loss3

    print("KERNEL_OK")
</pallas_src>

<mosaic_0001>
module attributes {stable_mosaic.version = 11 : i64} {
  func.func @_nce_avg_kernel(%arg0: i32, %arg1: i32, %arg2: memref<8x17xf32, #tpu.memory_space<vmem>>, %arg3: memref<1x8x17xf32, #tpu.memory_space<vmem>>, %arg4: memref<1x8x1xf32, #tpu.memory_space<vmem>>) attributes {dimension_semantics = [#tpu.dimension_semantics<parallel>, #tpu.dimension_semantics<arbitrary>], iteration_bounds = array<i64: 1, 1>, scalar_prefetch = 0 : i64, scratch_operands = 0 : i64, tpu.core_type = #tpu.core_type<tc>, window_params = [{transform_indices = @transform_0, window_bounds = array<i64: 8, 17>}, {transform_indices = @transform_1, window_bounds = array<i64: 1, 8, 17>}, {transform_indices = @transform_2, window_bounds = array<i64: 1, 8, 1>}]} {
    %c0_i32 = arith.constant 0 : i32
    %0 = arith.cmpi eq, %arg1, %c0_i32 : i32
    %1 = arith.extui %0 : i1 to i32
    %c0_i32_0 = arith.constant 0 : i32
    %2 = arith.cmpi ne, %1, %c0_i32_0 : i32
    scf.if %2 {
      %cst_16 = arith.constant 0.000000e+00 : f32
      %21 = vector.broadcast %cst_16 : f32 to vector<1x8x17xf32>
      %c0_17 = arith.constant 0 : index
      %c0_18 = arith.constant 0 : index
      %c0_19 = arith.constant 0 : index
      %22 = vector.load %arg3[%c0_17, %c0_18, %c0_19] : memref<1x8x17xf32, #tpu.memory_space<vmem>>, vector<1x8x17xf32>
      tpu.vector_store %arg3[%c0_17, %c0_18, %c0_19], %21 {strides = array<i32>} : memref<1x8x17xf32, #tpu.memory_space<vmem>>, vector<1x8x17xf32>,
      %cst_20 = arith.constant 0.000000e+00 : f32
      %23 = vector.broadcast %cst_20 : f32 to vector<1x8x1xf32>
      %c0_21 = arith.constant 0 : index
      %c0_22 = arith.constant 0 : index
      %c0_23 = arith.constant 0 : index
      %24 = vector.load %arg4[%c0_21, %c0_22, %c0_23] : memref<1x8x1xf32, #tpu.memory_space<vmem>>, vector<1x8x1xf32>
      tpu.vector_store %arg4[%c0_21, %c0_22, %c0_23], %23 {strides = array<i32>} : memref<1x8x1xf32, #tpu.memory_space<vmem>>, vector<1x8x1xf32>,
    } else {
    }
    %c0 = arith.constant 0 : index
    %c0_1 = arith.constant 0 : index
    %3 = vector.load %arg2[%c0, %c0_1] : memref<8x17xf32, #tpu.memory_space<vmem>>, vector<8x17xf32>
    %cst = arith.constant 3.906350e-03 : f32
    %4 = vector.broadcast %cst : f32 to vector<8x17xf32>
    %5 = arith.addf %3, %4 : vector<8x17xf32>
    %6 = math.log %5 : vector<8x17xf32>
    %7 = vector.extract_strided_slice %3 {offsets = [0, 0], sizes = [8, 1], strides = [1, 1]} : vector<8x17xf32> to vector<8x1xf32>
    %8 = math.log %7 : vector<8x1xf32>
    %c0_2 = arith.constant 0 : index
    %c0_3 = arith.constant 0 : index
    %c0_4 = arith.constant 0 : index
    %9 = vector.load %arg3[%c0_2, %c0_3, %c0_4] : memref<1x8x17xf32, #tpu.memory_space<vmem>>, vector<1x8x17xf32>
    %10 = vector.shape_cast %6 : vector<8x17xf32> to vector<1x8x17xf32>
    %cst_5 = arith.constant dense<0.000000e+00> : vector<8x17xf32>
    %11 = vector.multi_reduction <add>, %10, %cst_5 [0] : vector<1x8x17xf32> to vector<8x17xf32>
    %12 = vector.shape_cast %11 : vector<8x17xf32> to vector<1x8x17xf32>
    %13 = arith.addf %9, %12 : vector<1x8x17xf32>
    %c0_6 = arith.constant 0 : index
    %c0_7 = arith.constant 0 : index
    %c0_8 = arith.constant 0 : index
    %14 = vector.load %arg3[%c0_6, %c0_7, %c0_8] : memref<1x8x17xf32, #tpu.memory_space<vmem>>, vector<1x8x17xf32>
    tpu.vector_store %arg3[%c0_6, %c0_7, %c0_8], %13 {strides = array<i32>} : memref<1x8x17xf32, #tpu.memory_space<vmem>>, vector<1x8x17xf32>,
    %c0_9 = arith.constant 0 : index
    %c0_10 = arith.constant 0 : index
    %c0_11 = arith.constant 0 : index
    %15 = vector.load %arg4[%c0_9, %c0_10, %c0_11] : memref<1x8x1xf32, #tpu.memory_space<vmem>>, vector<1x8x1xf32>
    %16 = vector.shape_cast %8 : vector<8x1xf32> to vector<1x8x1xf32>
    %cst_12 = arith.constant dense<0.000000e+00> : vector<8x1xf32>
    %17 = vector.multi_reduction <add>, %16, %cst_12 [0] : vector<1x8x1xf32> to vector<8x1xf32>
    %18 = vector.shape_cast %17 : vector<8x1xf32> to vector<1x8x1xf32>
    %19 = arith.addf %15, %18 : vector<1x8x1xf32>
    %c0_13 = arith.constant 0 : index
    %c0_14 = arith.constant 0 : index
    %c0_15 = arith.constant 0 : index
    %20 = vector.load %arg4[%c0_13, %c0_14, %c0_15] : memref<1x8x1xf32, #tpu.memory_space<vmem>>, vector<1x8x1xf32>
    tpu.vector_store %arg4[%c0_13, %c0_14, %c0_15], %19 {strides = array<i32>} : memref<1x8x1xf32, #tpu.memory_space<vmem>>, vector<1x8x1xf32>,
    return
  }
  func.func @transform_0(%arg0: i32, %arg1: i32) -> (i32, i32) {
    %c1_i32 = arith.constant 1 : i32
    %0 = arith.muli %arg0, %c1_i32 : i32
    %1 = arith.addi %0, %arg1 : i32
    %c0_i32 = arith.constant 0 : i32
    %2 = arith.minsi %1, %c0_i32 : i32
    %c0_i32_0 = arith.constant 0 : i32
    %c0_i32_1 = arith.constant 0 : i32
    return %2, %c0_i32_0 : i32, i32
  }
  func.func @transform_1(%arg0: i32, %arg1: i32) -> (i32, i32, i32) {
    %c0_i32 = arith.constant 0 : i32
    %c0_i32_0 = arith.constant 0 : i32
    %c0_i32_1 = arith.constant 0 : i32
    return %arg0, %c0_i32, %c0_i32_0 : i32, i32, i32
  }
  func.func @transform_2(%arg0: i32, %arg1: i32) -> (i32, i32, i32) {
    %c0_i32 = arith.constant 0 : i32
    %c0_i32_0 = arith.constant 0 : i32
    %c0_i32_1 = arith.constant 0 : i32
    return %arg0, %c0_i32, %c0_i32_0 : i32, i32, i32
  }
}

</mosaic_0001>

<bundles_post_ra>
// kernel: tpu_custom_call.1
= control target key start
LH: loop header
LB: loop body
LE: loop exit
PB: predicated region body
PF: predicated region fallthrough
CT: control target
= control target key end

     0   :  { %8 = vsyncpa [#allocation3], 0  ;;  %s186_s0 = inlined_call_operand.hbm [shape: f32[8,17], index: 0, kind: input, shape index: {}]   ;;  %s187_s1 = inlined_call_operand.hbm [shape: f32[1,8,17], index: 1, kind: output, shape index: {0}]   ;;  %s188_s2 = inlined_call_operand.vmem [shape: f32[1,8,1], index: 2, kind: output, shape index: {1}]  }
   0x1   :  { %9 = vsyncpa [#allocation4], 0  ;;  %s131_s9 = smov [#allocation2]   ;;  %s83_s13 = scalar_lea.hbm %s186_s0, 128 }
   0x2   :  { %s21_s10 = sshll.u32 %s131_s9, 4  ;;  %p84_p0 = scmp.ne.s32.totalorder %s186_s0, %s83_s13  ;;  %s22_s10 = int_to_ptr.vmem [resolvable:$true] %s21_s10 }
   0x3   :  { %p87_p1 = scmp.lt.u32.totalorder %s83_s13, %s186_s0 }
   0x5   :  { %p89_p2 = pnand %p87_p1, %p84_p0 }
   0x7   :  { %92 = shalt.err (!%p89_p2)
}
   0x8   :  { %s93_s18 = scalar_lea.vmem %s22_s10, 128  ;;  %p98_p4 = scmp.lt.s32.totalorder %s22_s10, %s22_s10 }
   0x9   :  { %p94_p3 = scmp.ne.s32.totalorder %s22_s10, %s93_s18  ;;  %p99_p5 = scmp.lt.s32.totalorder %s93_s18, %s93_s18 }
   0xb   :  { %p100_p6 = por %p99_p5, %p98_p4 }
   0xd   :  { %p101_p7 = pnand %p100_p6, %p94_p3 }
   0xf   :  { %104 = shalt.err (!%p101_p7)
}
  0x10   :  { %24 = dma.hbm_to_vmem [thread:$0]  %s186_s0, 128, %s22_s10, [#allocation3]  }
  0x11   :  { %127 = dma.done.wait [#allocation3], 128  }
  0x12   :  { %128 = vsyncadd [#allocation3], 4294967168  ;;  %vm35_vm0 = vcmask 138240   ;;  %vm37_vm1 = vcmask 7168   ;;  %v132_v0 = vmov 0.0   ;;  %v39_v1 = vld [vmem:[#allocation2] sm:$0xff] }
  0x13   :  { %36 = vst.msk [vmem:[#allocation5] sm:$0xff] %vm35_vm0, %v132_v0  ;;  %v40_v2 = vadd.f32 0.00390635, %v39_v1  ;;  %79 = vlog2.f32 %v39_v1  ;;  %s133_s0 = smov [#allocation5]  }
  0x14   :  { %38 = vst.msk [vmem:[%s188_s2] sm:$0xff] %vm37_vm1, %v132_v0  ;;  %s61_s25 = sshll.u32 %s133_s0, 4  ;;  %s62_s25 = int_to_ptr.vmem [resolvable:$true] %s61_s25 }
  0x15   :  { %81 = vlog2.f32 %v40_v2  ;;  %s105_s28 = scalar_lea.vmem %s62_s25, 128  ;;  %p110_p9 = scmp.lt.s32.totalorder %s62_s25, %s62_s25 }
  0x16   :  { %p106_p8 = scmp.ne.s32.totalorder %s62_s25, %s105_s28  ;;  %p111_p10 = scmp.lt.s32.totalorder %s105_s28, %s105_s28 }
  0x18   :  { %p112_p11 = por %p111_p10, %p110_p9 }
  0x1a   :  { %v45_v7 = vld [vmem:[#allocation5] sm:$0xff]  ;;  %p113_p12 = pnand %p112_p11, %p106_p8 }
  0x1b   :  { %v50_v4 = vld [vmem:[%s188_s2] sm:$0xff] }
  0x1d   :  { %v80_v3 = vpop.eup %79 }
  0x1e   :  { %v44_v5 = vmul.f32 0.6931472, %v80_v3 }
  0x1f   :  { %v82_v6 = vpop.eup %81 }
  0x20   :  { %v42_v8 = vmul.f32 0.6931472, %v82_v6  ;;  %v52_v9 = vadd.f32 %v50_v4, %v44_v5 }
  0x22   :  { %v47_v10 = vadd.f32 %v45_v7, %v42_v8  ;;  %54 = vst.msk [vmem:[%s188_s2] sm:$0xff] %vm37_vm1, %v52_v9 }
  0x24   :  { %49 = vst.msk [vmem:[#allocation5] sm:$0xff] %vm35_vm0, %v47_v10 }
  0x25   :  { %116 = shalt.err (!%p113_p12)
}
  0x26   :  { %s117_s3 = scalar_lea.hbm %s187_s1, 128 }
  0x27   :  { %p118_p13 = scmp.ne.s32.totalorder %s187_s1, %s117_s3  ;;  %p121_p0 = scmp.lt.u32.totalorder %s117_s3, %s187_s1 }
  0x29   :  { %p123_p1 = pnand %p121_p0, %p118_p13 }
  0x2b   :  { %126 = shalt.err (!%p123_p1)
}
  0x2c   :  { %64 = dma.vmem_to_hbm [thread:$0]  %s62_s25, 128, %s187_s1, [#allocation4]  }
  0x2d   :  { %129 = dma.done.wait [#allocation4], 128  }
  0x2e   :  { %130 = vsyncadd [#allocation4], 4294967168 }
  0x2f   :  { %72 = vsyncpa [#allocation3], 1 }
  0x30   :  { %73 = vsyncpa [#allocation4], 1 }

</bundles_post_ra>
